<compile_context>
chip_gen: v7x
topology: tpu7x:2x2x1
jax: 0.10.0
libtpu: 0.0.40
codegen_flags: <defaults>
</compile_context>

<pallas_src>
import jax
import jax.numpy as jnp
from jax.experimental import pallas as pl
from jax.experimental.pallas import tpu as pltpu


def awl_kernel(pl_ref, o_ref):
    """pl_ref: (2, num) f32 in VMEM (row 0 = params, row 1 = losses);
       o_ref : (1, 1) f32 in SMEM (scalar result)."""
    data = pl_ref[...].astype(jnp.float32)
    p = data[0:1, :]          # (1, num) params
    l = data[1:2, :]          # (1, num) losses
    p2 = p * p
    # 0.5 / p^2 * loss + log(1 + p^2), elementwise over the num tasks.
    terms = (0.5 * l) * pl.reciprocal(p2, approx=False) + jnp.log(1.0 + p2)
    # On-chip reduction over the task dimension -> single scalar to SMEM.
    o_ref[0, 0] = jnp.sum(terms)


def automatic_weighted_loss(params, losses):
    """Forward of AutomaticWeightedLoss.

    params: (num,) learnable weights (PyTorch init: ones(num)).
    losses: (num,) vector of loss scalars.
    Returns a scalar f32.
    """
    params = jnp.asarray(params, jnp.float32)
    losses = jnp.asarray(losses, jnp.float32)
    num = params.shape[0]
    assert losses.shape == (num,), "number of losses must match number of params"

    merged = jnp.stack([params, losses], axis=0)  # (2, num): one tile, one DMA

    out = pl.pallas_call(
        awl_kernel,
        out_shape=jax.ShapeDtypeStruct((1, 1), jnp.float32),
        in_specs=[pl.BlockSpec(memory_space=pltpu.MemorySpace.VMEM)],
        out_specs=pl.BlockSpec(memory_space=pltpu.MemorySpace.SMEM),
    )(merged)
    return out[0, 0]


def automatic_weighted_loss_varargs(params, *losses):
    """Convenience wrapper mirroring torch's forward(*x) signature."""
    vec = jnp.stack([jnp.asarray(l, jnp.float32).reshape(()) for l in losses])
    return automatic_weighted_loss(params, vec)


def _reference(params, losses_vec):
    """Pure-JAX reference for correctness check."""
    p2 = params.astype(jnp.float32) ** 2
    return jnp.sum(0.5 / p2 * losses_vec.astype(jnp.float32) + jnp.log(1.0 + p2))


if __name__ == "__main__":
    num = 2  # AutomaticWeightedLoss(num=2)

    key = jax.random.PRNGKey(0)
    kp, kl = jax.random.split(key)

    # PyTorch init is torch.ones(num); the parameter is learnable, so perturb
    # slightly to exercise the full formula deterministically.
    params = 1.0 + 0.1 * jax.random.normal(kp, (num,), dtype=jnp.float32)
    # Two upstream loss scalars (loss_seg, loss_edge): positive, deterministic.
    loss_vals = jnp.abs(jax.random.normal(kl, (num,), dtype=jnp.float32))

    out = automatic_weighted_loss(params, loss_vals)
    out = jax.block_until_ready(out)

    ref = _reference(params, loss_vals)
    assert out.shape == ()
    assert jnp.allclose(out, ref, atol=1e-5, rtol=1e-5), "mismatch vs reference"

    # Also exercise the variadic (torch-like) entry point.
    out2 = jax.block_until_ready(
        automatic_weighted_loss_varargs(params, loss_vals[0], loss_vals[1]))
    assert jnp.allclose(out2, ref, atol=1e-5, rtol=1e-5), "varargs mismatch"

    print("KERNEL_OK")
</pallas_src>

<mosaic_0001>
module attributes {stable_mosaic.version = 11 : i64} {
  func.func @awl_kernel(%arg0: memref<2x2xf32, #tpu.memory_space<vmem>>, %arg1: memref<1x1xf32, #tpu.memory_space<smem>>) attributes {dimension_semantics = [], scalar_prefetch = 0 : i64, scratch_operands = 0 : i64, tpu.core_type = #tpu.core_type<tc>} {
    %c0 = arith.constant 0 : index
    %c0_0 = arith.constant 0 : index
    %0 = vector.load %arg0[%c0, %c0_0] : memref<2x2xf32, #tpu.memory_space<vmem>>, vector<2x2xf32>
    %1 = vector.extract_strided_slice %0 {offsets = [0, 0], sizes = [1, 2], strides = [1, 1]} : vector<2x2xf32> to vector<1x2xf32>
    %2 = vector.extract_strided_slice %0 {offsets = [1, 0], sizes = [1, 2], strides = [1, 1]} : vector<2x2xf32> to vector<1x2xf32>
    %3 = arith.mulf %1, %1 : vector<1x2xf32>
    %cst = arith.constant 5.000000e-01 : f32
    %4 = vector.broadcast %cst : f32 to vector<1x2xf32>
    %5 = arith.mulf %4, %2 : vector<1x2xf32>
    %6 = tpu.reciprocal %3 : vector<1x2xf32> -> vector<1x2xf32>
    %7 = arith.mulf %5, %6 : vector<1x2xf32>
    %cst_1 = arith.constant 1.000000e+00 : f32
    %8 = vector.broadcast %cst_1 : f32 to vector<1x2xf32>
    %9 = arith.addf %8, %3 : vector<1x2xf32>
    %10 = math.log %9 : vector<1x2xf32>
    %11 = arith.addf %7, %10 : vector<1x2xf32>
    %12 = vector.shape_cast %11 : vector<1x2xf32> to vector<1x1x2xf32>
    %cst_2 = arith.constant dense<0.000000e+00> : vector<1xf32>
    %13 = vector.multi_reduction <add>, %12, %cst_2 [1, 2] : vector<1x1x2xf32> to vector<1xf32>
    %14 = vector.shape_cast %13 : vector<1xf32> to vector<1x1x1xf32>
    %15 = vector.extract %14[0, 0, 0] : f32 from vector<1x1x1xf32>
    %c0_3 = arith.constant 0 : index
    %c0_4 = arith.constant 0 : index
    %16 = memref.load %arg1[%c0_3, %c0_4] : memref<1x1xf32, #tpu.memory_space<smem>>
    memref.store %15, %arg1[%c0_3, %c0_4] : memref<1x1xf32, #tpu.memory_space<smem>>
    return
  }
}

</mosaic_0001>

<bundles_post_ra>
// kernel: tpu_custom_call.1
= control target key start
LH: loop header
LB: loop body
LE: loop exit
PB: predicated region body
PF: predicated region fallthrough
CT: control target
= control target key end

     0   :  { %6 = vsyncpa [#allocation3], 0  ;;  %s146_s0 = inlined_call_operand.hbm [shape: f32[2,2], index: 0, kind: input, shape index: {}]   ;;  %s147_s1 = inlined_call_operand.hbm [shape: f32[1,1], index: 1, kind: output, shape index: {}]  }
   0x1   :  { %7 = vsyncpa [#allocation4], 0  ;;  %s110_s6 = smov [#allocation2]   ;;  %s74_s10 = scalar_lea.hbm %s146_s0, 32 }
   0x2   :  { %s14_s7 = sshll.u32 %s110_s6, 4  ;;  %p75_p0 = scmp.ne.s32.totalorder %s146_s0, %s74_s10  ;;  %s15_s7 = int_to_ptr.vmem [resolvable:$true] %s14_s7 }
   0x3   :  { %p78_p1 = scmp.lt.u32.totalorder %s74_s10, %s146_s0 }
   0x5   :  { %p80_p2 = pnand %p78_p1, %p75_p0 }
   0x7   :  { %83 = shalt.err (!%p80_p2)
}
   0x8   :  { %s84_s15 = scalar_lea.vmem %s15_s7, 32  ;;  %p89_p4 = scmp.lt.s32.totalorder %s15_s7, %s15_s7 }
   0x9   :  { %p85_p3 = scmp.ne.s32.totalorder %s15_s7, %s84_s15  ;;  %p90_p5 = scmp.lt.s32.totalorder %s84_s15, %s84_s15 }
   0xb   :  { %p91_p6 = por %p90_p5, %p89_p4 }
   0xd   :  { %p92_p7 = pnand %p91_p6, %p85_p3 }
   0xf   :  { %95 = shalt.err (!%p92_p7)
}
  0x10   :  { %17 = dma.hbm_to_vmem [thread:$0]  %s146_s0, 32, %s15_s7, [#allocation3]  }
  0x11   :  { %106 = dma.done.wait [#allocation3], 32  }
  0x12   :  { %107 = vsyncadd [#allocation3], 4294967264  ;;  %v21_v0 = vld [vmem:[#allocation2] sm:$0x3]  ;;  %vm39_vm0 = vcmask 8192   ;;  %s96_s20 = scalar_lea.hbm %s147_s1, 16 }
  0x13   :  { %v22_v1 = vmul.f32 %v21_v0, %v21_v0  ;;  %v23_v3 = vmul.f32 0.5, %v21_v0  ;;  %p97_p8 = scmp.ne.s32.totalorder %s147_s1, %s96_s20  ;;  %p100_p9 = scmp.lt.u32.totalorder %s96_s20, %s147_s1 }
  0x15   :  { %70 = vrcp.f32 %v22_v1  ;;  %v29_v2 = vadd.f32 1.0, %v22_v1  ;;  %p102_p10 = pnand %p100_p9, %p97_p8 }
  0x17   :  { %72 = vlog2.f32 %v29_v2 }
  0x1f   :  { %v71_v4 = vpop.eup %70 }
  0x20   :  { %v26_v5 = vrot.slane %v71_v4, 7 }
  0x21   :  { %v73_v6 = vpop.eup %72 }
  0x22   :  { %v28_v7 = vmul.f32 %v26_v5, %v23_v3  ;;  %v31_v8 = vmul.f32 0.6931472, %v73_v6 }
  0x24   :  { %v33_v9 = vrot.slane %v31_v8, 7 }
  0x26   :  { %v35_v10 = vadd.f32 %v33_v9, %v28_v7 }
  0x28   :  { %v37_v11 = vrot.slane %v35_v10, 1 }
  0x2a   :  { %v40_v12 = vsel %vm39_vm0, %v37_v11, 0.0 }
  0x2b   :  { %41 = vadd.xlane.f32.xlu0 %v40_v12 }
  0xb8   :  { %v42_v13 = vpop.xlane.xlu0 %41 }
  0xb9   :  { %v43_v14 = vrot.slane %v42_v13, 4 }
  0xbb   :  { %v44_v15 = vadd.f32 %v43_v14, %v42_v13 }
  0xbd   :  { %v45_v16 = vrot.slane %v44_v15, 2 }
  0xbf   :  { %v46_v17 = vadd.f32 %v45_v16, %v44_v15 }
  0xc1   :  { %v47_v18 = vrot.slane %v46_v17, 1 }
  0xc3   :  { %v48_v19 = vadd.f32 %v47_v18, %v46_v17 }
  0xc5   :  { %66 = vpush %v48_v19 }
  0xf6   :  { %s67_s0 = spop %66 }
  0xf7   :  { %51 = sst [smem:[#allocation5]] %s67_s0 }
  0xf8   :  { %105 = shalt.err (!%p102_p10)
}
  0xf9   :  { %s111_s25 = smov [#allocation5]  }
  0xfa   :  { %59 = dma.smem_to_hbm %s111_s25, 16, %s147_s1, [#allocation4]  }
  0xfb   :  { %108 = dma.done.wait [#allocation4], 16  }
  0xfc   :  { %109 = vsyncadd [#allocation4], 4294967280 }
  0xfd   :  { %63 = sfence }
  0xfe   :  { %64 = vsyncpa [#allocation3], 1 }
  0xff   :  { %65 = vsyncpa [#allocation4], 1 }

</bundles_post_ra>
